<compile_context>
chip_gen: v7x
topology: tpu7x:2x2x1
jax: 0.10.0
libtpu: 0.0.40
codegen_flags: <defaults>
</compile_context>

<pallas_src>
import math
import functools

import jax
import jax.numpy as jnp
from jax.experimental import pallas as pl
from jax.experimental.pallas import tpu as pltpu


# Contract the last dim of q_h with the last dim of k_h (q @ k^T) without
# materializing a transpose — same dimension numbers the official Pallas TPU
# flash-attention kernel uses.
_NT_DIM_NUMBERS = (((1,), (1,)), ((), ()))


def _mhca_kernel(x_ref, y_ref, wkvT_ref, bkv_ref, wqT_ref, bq_ref, woT_ref,
                 bo_ref, o_ref, kv_ref, *, num_heads, head_dim, d_model,
                 compute_dtype):
    """Grid = (B, num_q_tiles).

    kv_ref is a per-core VMEM scratch holding the de-interleaved K/V projection
    of the current batch element; it is computed once per batch element (at
    q-tile 0) and reused by every Q tile.
    """
    # --- K/V projection: once per batch element ------------------------------
    @pl.when(pl.program_id(1) == 0)
    def _():
        x = x_ref[0]                                              # (S, D)
        kv = jnp.dot(x, wkvT_ref[...],
                     preferred_element_type=jnp.float32) + bkv_ref[...]
        # Store in compute dtype: halves scratch bytes in the bf16 path and
        # feeds the attention matmuls' MXU operands natively.
        kv_ref[...] = kv.astype(kv_ref.dtype)

    # --- Q projection for this Q tile -----------------------------------------
    # 1/sqrt(head_dim) is already folded into wqT / bq by the wrapper.
    y = y_ref[0]                                                   # (TQ, D)
    q = jnp.dot(y, wqT_ref[...],
                preferred_element_type=jnp.float32) + bq_ref[...]
    q = q.astype(compute_dtype)                                    # MXU operand dtype

    kv = kv_ref[...]                                               # (S, 2D)
    tq = q.shape[0]

    # --- Per-head attention with the output projection folded in --------------
    acc = jnp.zeros((tq, d_model), jnp.float32)                    # (TQ, D) f32
    for h in range(num_heads):
        lo = h * head_dim
        hi = lo + head_dim
        k_h = kv[:, lo:hi]                             # (S, hd)
        v_h = kv[:, d_model + lo:d_model + hi]         # (S, hd)
        q_h = q[:, lo:hi]                              # (TQ, hd)

        # scores = q_h @ k_h^T (scale pre-folded; no materialized transpose).
        s = jax.lax.dot_general(q_h, k_h, _NT_DIM_NUMBERS,
                                preferred_element_type=jnp.float32)   # (TQ, S)
        # Numerically-stable softmax over keys; normalization deferred to the
        # (TQ, hd) head output instead of the (TQ, S) probability tile.
        s = s - jnp.max(s, axis=-1, keepdims=True)
        p = jnp.exp(s)
        inv_l = pl.reciprocal(jnp.sum(p, axis=-1, keepdims=True), approx=True)

        head_out = jnp.dot(p.astype(compute_dtype), v_h,
                           preferred_element_type=jnp.float32)        # (TQ, hd)
        head_out = head_out * inv_l

        # Output-projection contribution of this head: rows [h*hd, (h+1)*hd)
        # of Wo^T (sublane-aligned slice) — keeps every matmul N = D lane-dense
        # and avoids concatenating sub-128-lane head outputs.
        acc = acc + jnp.dot(head_out.astype(woT_ref.dtype),
                            woT_ref[lo:hi, :],
                            preferred_element_type=jnp.float32)

    # Single lane-dense store of this Q tile (+ bias).
    o_ref[0] = (acc + bo_ref[...]).astype(o_ref.dtype)


def _pick_q_tile(S):
    """Query tile size: prefer 256–512 to bound the (TQ, S) score tile; take
    the whole sequence when it is small or has awkward factors."""
    if S <= 256:
        return S
    for t in (256, 512, 384, 128):
        if S % t == 0:
            return t
    return S


def _vmem_limit_bytes(S, TQ, D, itemsize):
    """Tile-derived VMEM budget, clamped below the physical capacity."""
    io = 2 * (S * D + 2 * TQ * D) * itemsize          # x + y + out (double-buffered)
    weights = 4 * D * D * itemsize + 4 * D * 4        # Buffered(1) weights + f32 biases
    kv_scratch = 2 * S * D * itemsize                 # persistent K/V scratch
    temps = TQ * D * itemsize + TQ * S * 4 + 2 * TQ * D * 4
    required = io + weights + kv_scratch + temps
    try:
        cap = int(getattr(pltpu.get_tpu_info(), "vmem_capacity_bytes", 0)) or (64 << 20)
    except Exception:
        cap = 64 << 20                                # v7x-safe fallback
    return int(min(max(required + (8 << 20), 32 << 20), cap - (8 << 20)))


def multi_head_cross_attention(x, y, params, *, num_heads, compute_dtype=None):
    """x: (B, S, D) provides K/V; y: (B, S, D) provides Q.

    params = (wkv, bkv, wq, bq, wo, bo) in PyTorch nn.Linear convention
    (W: (out_features, in_features), applied as a @ W.T + b).

    compute_dtype: optional dtype (e.g. jnp.bfloat16) for all MXU operands
    (activations, weights, kv, q, attention probabilities).  Accumulation,
    softmax math, and the output accumulator stay f32.
    """
    B, S, D = x.shape
    head_dim = D // num_heads
    out_dtype = x.dtype
    wkv, bkv, wq, bq, wo, bo = params

    cd = compute_dtype if compute_dtype is not None else x.dtype

    # --- Wrapper-side layout plumbing (free at trace time) --------------------
    # De-interleave the kv projection's output features so K occupies columns
    # [0, D) and V columns [D, 2D) (torch layout interleaves [k_h, v_h] strips).
    idx = jnp.arange(2 * D).reshape(num_heads, 2 * head_dim)
    perm = jnp.concatenate([idx[:, :head_dim].reshape(-1),
                            idx[:, head_dim:].reshape(-1)])
    wkv_d = wkv[perm, :]
    bkv_d = bkv[perm]

    # Pre-transpose to (in, out); fold 1/sqrt(head_dim) into the Q projection.
    scale = 1.0 / math.sqrt(head_dim)
    wkvT = wkv_d.T.astype(cd)                 # (D, 2D)
    wqT = (wq.T * scale).astype(cd)           # (D, D), scale folded
    woT = wo.T.astype(cd)                     # (D, D)

    x_c = x.astype(cd)
    y_c = y.astype(cd)

    # Biases stay f32 (added after f32-accumulated matmuls); 2-D rows.
    bkv2 = bkv_d.reshape(1, 2 * D).astype(jnp.float32)
    bq2 = (bq * scale).reshape(1, D).astype(jnp.float32)
    bo2 = bo.reshape(1, D).astype(jnp.float32)

    TQ = _pick_q_tile(S)
    num_q_tiles = S // TQ

    kernel = functools.partial(_mhca_kernel, num_heads=num_heads,
                               head_dim=head_dim, d_model=D, compute_dtype=cd)

    def const_spec(shape):
        # Constant-index blocks: single-buffered (double-buffering them only
        # burns VMEM — biggest relative win on v7x's 64 MiB).
        return pl.BlockSpec(shape, lambda b, qi: tuple(0 for _ in shape),
                            pipeline_mode=pl.Buffered(1))

    itemsize = int(jnp.dtype(cd).itemsize)

    # Advisory cost estimate so XLA schedules surrounding ops correctly.
    flops = B * (2 * S * D * (2 * D)                    # kv projection
                 + 2 * S * D * D                        # q projection
                 + 4 * num_heads * S * S * head_dim     # qk^T and p@v
                 + 2 * S * D * D)                       # output projection
    transcendentals = B * num_heads * S * S             # exp in softmax
    bytes_accessed = (3 * B * S * D * itemsize          # x, y, out
                      + 4 * D * D * itemsize            # weights
                      + 4 * D * 4)                      # biases

    return pl.pallas_call(
        kernel,
        out_shape=jax.ShapeDtypeStruct((B, S, D), out_dtype),
        grid=(B, num_q_tiles),
        in_specs=[
            pl.BlockSpec((1, S, D), lambda b, qi: (b, 0, 0)),     # x (full seq, K/V)
            pl.BlockSpec((1, TQ, D), lambda b, qi: (b, qi, 0)),   # y (Q tile)
            const_spec((D, 2 * D)),                               # Wkv^T (de-interleaved)
            const_spec((1, 2 * D)),                               # bkv (de-interleaved)
            const_spec((D, D)),                                   # Wq^T (scale folded)
            const_spec((1, D)),                                   # bq   (scale folded)
            const_spec((D, D)),                                   # Wo^T
            const_spec((1, D)),                                   # bo
        ],
        out_specs=pl.BlockSpec((1, TQ, D), lambda b, qi: (b, qi, 0)),
        scratch_shapes=[pltpu.VMEM((S, 2 * D), cd)],              # persistent K/V
        compiler_params=pltpu.CompilerParams(
            dimension_semantics=("parallel", "arbitrary"),
            vmem_limit_bytes=_vmem_limit_bytes(S, TQ, D, itemsize),
        ),
        cost_estimate=pl.CostEstimate(flops=flops,
                                      transcendentals=transcendentals,
                                      bytes_accessed=bytes_accessed),
    )(x_c, y_c, wkvT, bkv2, wqT, bq2, woT, bo2)


def _reference(x, y, params, *, num_heads):
    """Pure-JAX reference mirroring the PyTorch forward (highest precision)."""
    B, S, D = x.shape
    hd = D // num_heads
    wkv, bkv, wq, bq, wo, bo = params
    with jax.default_matmul_precision("highest"):
        kv = x @ wkv.T + bkv                      # (B, S, 2D)
        q = y @ wq.T + bq                         # (B, S, D)
        kv = kv.reshape(B, S, num_heads, 2 * hd).transpose(0, 2, 1, 3)
        q = q.reshape(B, S, num_heads, hd).transpose(0, 2, 1, 3)
        k, v = kv[..., :hd], kv[..., hd:]
        scaled = jnp.einsum("bhqd,bhkd->bhqk", q, k) / math.sqrt(hd)
        attn = jax.nn.softmax(scaled, axis=-1)
        vals = jnp.einsum("bhqk,bhkd->bhqd", attn, v)
        vals = vals.transpose(0, 2, 1, 3).reshape(B, S, D)
        return vals @ wo.T + bo


if __name__ == "__main__":
    def make_params(key, D):
        ks = jax.random.split(key, 6)
        bound = 1.0 / math.sqrt(D)
        wkv = jax.random.uniform(ks[0], (2 * D, D), jnp.float32, -bound, bound)
        bkv = jax.random.uniform(ks[1], (2 * D,), jnp.float32, -bound, bound)
        wq = jax.random.uniform(ks[2], (D, D), jnp.float32, -bound, bound)
        bq = jax.random.uniform(ks[3], (D,), jnp.float32, -bound, bound)
        wo = jax.random.uniform(ks[4], (D, D), jnp.float32, -bound, bound)
        bo = jax.random.uniform(ks[5], (D,), jnp.float32, -bound, bound)
        return (wkv, bkv, wq, bq, wo, bo)

    key = jax.random.PRNGKey(0)

    # ---- Small shape (single Q tile per batch element) -----------------------
    B, S, D, H = 2, 8, 32, 4     # head_dim = 8
    k0, k1, k2, key = jax.random.split(key, 4)
    params = make_params(k0, D)
    x = jax.random.normal(k1, (B, S, D), jnp.float32)   # provides K, V
    y = jax.random.normal(k2, (B, S, D), jnp.float32)   # provides Q
    ref = _reference(x, y, params, num_heads=H)

    out = jax.block_until_ready(
        multi_head_cross_attention(x, y, params, num_heads=H))
    assert out.shape == (B, S, D)
    assert jnp.allclose(out, ref, atol=5e-3, rtol=5e-3), "f32 mismatch vs reference"

    # bf16 MXU-operand path: f32 accumulation / softmax, loose tolerance.
    out_bf16 = jax.block_until_ready(
        multi_head_cross_attention(x, y, params, num_heads=H,
                                   compute_dtype=jnp.bfloat16))
    assert out_bf16.shape == (B, S, D)
    assert jnp.allclose(out_bf16.astype(jnp.float32), ref, atol=1e-1, rtol=1e-1), \
        "bf16 mismatch vs reference"

    # ---- Larger sequence: exercises the Q-tile grid axis + kv scratch reuse --
    B2, S2, D2, H2 = 1, 512, 128, 4     # TQ = 256 -> 2 Q tiles per batch element
    k0, k1, k2, key = jax.random.split(key, 4)
    params2 = make_params(k0, D2)
    x2 = jax.random.normal(k1, (B2, S2, D2), jnp.float32)
    y2 = jax.random.normal(k2, (B2, S2, D2), jnp.float32)
    ref2 = _reference(x2, y2, params2, num_heads=H2)
    out2 = jax.block_until_ready(
        multi_head_cross_attention(x2, y2, params2, num_heads=H2))
    assert out2.shape == (B2, S2, D2)
    assert jnp.allclose(out2, ref2, atol=1e-2, rtol=1e-2), \
        "tiled f32 mismatch vs reference"

    print("KERNEL_OK")
</pallas_src>

<mosaic_0001>
module attributes {stable_mosaic.version = 11 : i64} {
  func.func @_mhca_kernel(%arg0: i32, %arg1: i32, %arg2: memref<1x8x32xf32, #tpu.memory_space<vmem>>, %arg3: memref<1x8x32xf32, #tpu.memory_space<vmem>>, %arg4: memref<32x64xf32, #tpu.memory_space<vmem>>, %arg5: memref<1x64xf32, #tpu.memory_space<vmem>>, %arg6: memref<32x32xf32, #tpu.memory_space<vmem>>, %arg7: memref<1x32xf32, #tpu.memory_space<vmem>>, %arg8: memref<32x32xf32, #tpu.memory_space<vmem>>, %arg9: memref<1x32xf32, #tpu.memory_space<vmem>>, %arg10: memref<1x8x32xf32, #tpu.memory_space<vmem>>, %arg11: memref<8x64xf32, #tpu.memory_space<vmem>>) attributes {dimension_semantics = [#tpu.dimension_semantics<parallel>, #tpu.dimension_semantics<arbitrary>], iteration_bounds = array<i64: 2, 1>, scalar_prefetch = 0 : i64, scratch_operands = 1 : i64, tpu.core_type = #tpu.core_type<tc>, window_params = [{transform_indices = @transform_0, window_bounds = array<i64: 1, 8, 32>}, {transform_indices = @transform_1, window_bounds = array<i64: 1, 8, 32>}, {pipeline_mode = #tpu.pipeline_mode<synchronous>, transform_indices = @transform_2, window_bounds = array<i64: 32, 64>}, {pipeline_mode = #tpu.pipeline_mode<synchronous>, transform_indices = @transform_3, window_bounds = array<i64: 1, 64>}, {pipeline_mode = #tpu.pipeline_mode<synchronous>, transform_indices = @transform_4, window_bounds = array<i64: 32, 32>}, {pipeline_mode = #tpu.pipeline_mode<synchronous>, transform_indices = @transform_5, window_bounds = array<i64: 1, 32>}, {pipeline_mode = #tpu.pipeline_mode<synchronous>, transform_indices = @transform_6, window_bounds = array<i64: 32, 32>}, {pipeline_mode = #tpu.pipeline_mode<synchronous>, transform_indices = @transform_7, window_bounds = array<i64: 1, 32>}, {transform_indices = @transform_8, window_bounds = array<i64: 1, 8, 32>}]} {
    %c0_i32 = arith.constant 0 : i32
    %0 = arith.cmpi eq, %arg1, %c0_i32 : i32
    %1 = arith.extui %0 : i1 to i32
    %c0_i32_0 = arith.constant 0 : i32
    %2 = arith.cmpi ne, %1, %c0_i32_0 : i32
    scf.if %2 {
      %c0_40 = arith.constant 0 : index
      %c0_41 = arith.constant 0 : index
      %c0_42 = arith.constant 0 : index
      %90 = vector.load %arg2[%c0_40, %c0_41, %c0_42] : memref<1x8x32xf32, #tpu.memory_space<vmem>>, vector<1x8x32xf32>
      %91 = vector.shape_cast %90 : vector<1x8x32xf32> to vector<8x32xf32>
      %c0_43 = arith.constant 0 : index
      %c0_44 = arith.constant 0 : index
      %92 = vector.load %arg4[%c0_43, %c0_44] : memref<32x64xf32, #tpu.memory_space<vmem>>, vector<32x64xf32>
      %cst_45 = arith.constant dense<0.000000e+00> : vector<8x64xf32>
      %93 = tpu.matmul %91, %92, %cst_45 {dimension_numbers = #tpu.dot_dimension_numbers<[1], [0], [0], [1], [0, 0, 1, 1], [], []>} : vector<8x32xf32>, vector<32x64xf32>, vector<8x64xf32> -> vector<8x64xf32>
      %c0_46 = arith.constant 0 : index
      %c0_47 = arith.constant 0 : index
      %94 = vector.load %arg5[%c0_46, %c0_47] : memref<1x64xf32, #tpu.memory_space<vmem>>, vector<1x64xf32>
      %95 = vector.broadcast %94 : vector<1x64xf32> to vector<8x64xf32>
      %96 = arith.addf %93, %95 : vector<8x64xf32>
      %c0_48 = arith.constant 0 : index
      %c0_49 = arith.constant 0 : index
      %97 = vector.load %arg11[%c0_48, %c0_49] : memref<8x64xf32, #tpu.memory_space<vmem>>, vector<8x64xf32>
      tpu.vector_store %arg11[%c0_48, %c0_49], %96 {strides = array<i32>} : memref<8x64xf32, #tpu.memory_space<vmem>>, vector<8x64xf32>,
    } else {
    }
    %c0 = arith.constant 0 : index
    %c0_1 = arith.constant 0 : index
    %c0_2 = arith.constant 0 : index
    %3 = vector.load %arg3[%c0, %c0_1, %c0_2] : memref<1x8x32xf32, #tpu.memory_space<vmem>>, vector<1x8x32xf32>
    %4 = vector.shape_cast %3 : vector<1x8x32xf32> to vector<8x32xf32>
    %c0_3 = arith.constant 0 : index
    %c0_4 = arith.constant 0 : index
    %5 = vector.load %arg6[%c0_3, %c0_4] : memref<32x32xf32, #tpu.memory_space<vmem>>, vector<32x32xf32>
    %cst = arith.constant dense<0.000000e+00> : vector<8x32xf32>
    %6 = tpu.matmul %4, %5, %cst {dimension_numbers = #tpu.dot_dimension_numbers<[1], [0], [0], [1], [0, 0, 1, 1], [], []>} : vector<8x32xf32>, vector<32x32xf32>, vector<8x32xf32> -> vector<8x32xf32>
    %c0_5 = arith.constant 0 : index
    %c0_6 = arith.constant 0 : index
    %7 = vector.load %arg7[%c0_5, %c0_6] : memref<1x32xf32, #tpu.memory_space<vmem>>, vector<1x32xf32>
    %8 = vector.broadcast %7 : vector<1x32xf32> to vector<8x32xf32>
    %9 = arith.addf %6, %8 : vector<8x32xf32>
    %c0_7 = arith.constant 0 : index
    %c0_8 = arith.constant 0 : index
    %10 = vector.load %arg11[%c0_7, %c0_8] : memref<8x64xf32, #tpu.memory_space<vmem>>, vector<8x64xf32>
    %cst_9 = arith.constant 0.000000e+00 : f32
    %11 = vector.broadcast %cst_9 : f32 to vector<8x32xf32>
    %12 = vector.extract_strided_slice %10 {offsets = [0, 0], sizes = [8, 8], strides = [1, 1]} : vector<8x64xf32> to vector<8x8xf32>
    %13 = vector.extract_strided_slice %10 {offsets = [0, 32], sizes = [8, 8], strides = [1, 1]} : vector<8x64xf32> to vector<8x8xf32>
    %14 = vector.extract_strided_slice %9 {offsets = [0, 0], sizes = [8, 8], strides = [1, 1]} : vector<8x32xf32> to vector<8x8xf32>
    %cst_10 = arith.constant dense<0.000000e+00> : vector<8x8xf32>
    %15 = tpu.matmul %14, %12, %cst_10 {dimension_numbers = #tpu.dot_dimension_numbers<[1], [1], [0], [0], [0, 0, 1, 0], [], []>} : vector<8x8xf32>, vector<8x8xf32>, vector<8x8xf32> -> vector<8x8xf32>
    %cst_11 = arith.constant dense<0xFF800000> : vector<8xf32>
    %16 = vector.multi_reduction <maximumf>, %15, %cst_11 [1] : vector<8x8xf32> to vector<8xf32>
    %17 = vector.shape_cast %16 : vector<8xf32> to vector<8x1xf32>
    %18 = vector.broadcast %17 : vector<8x1xf32> to vector<8x8xf32>
    %19 = arith.subf %15, %18 : vector<8x8xf32>
    %20 = math.exp %19 : vector<8x8xf32>
    %cst_12 = arith.constant dense<0.000000e+00> : vector<8xf32>
    %21 = vector.multi_reduction <add>, %20, %cst_12 [1] : vector<8x8xf32> to vector<8xf32>
    %22 = vector.shape_cast %21 : vector<8xf32> to vector<8x1xf32>
    %23 = tpu.reciprocal %22 {approx = true} : vector<8x1xf32> -> vector<8x1xf32>
    %cst_13 = arith.constant dense<0.000000e+00> : vector<8x8xf32>
    %24 = tpu.matmul %20, %13, %cst_13 {dimension_numbers = #tpu.dot_dimension_numbers<[1], [0], [0], [1], [0, 0, 1, 1], [], []>} : vector<8x8xf32>, vector<8x8xf32>, vector<8x8xf32> -> vector<8x8xf32>
    %25 = vector.broadcast %23 : vector<8x1xf32> to vector<8x8xf32>
    %26 = arith.mulf %24, %25 : vector<8x8xf32>
    %c0_14 = arith.constant 0 : index
    %c0_15 = arith.constant 0 : index
    %27 = vector.load %arg8[%c0_14, %c0_15] : memref<32x32xf32, #tpu.memory_space<vmem>>, vector<8x32xf32>
    %cst_16 = arith.constant dense<0.000000e+00> : vector<8x32xf32>
    %28 = tpu.matmul %26, %27, %cst_16 {dimension_numbers = #tpu.dot_dimension_numbers<[1], [0], [0], [1], [0, 0, 1, 1], [], []>} : vector<8x8xf32>, vector<8x32xf32>, vector<8x32xf32> -> vector<8x32xf32>
    %29 = arith.addf %11, %28 : vector<8x32xf32>
    %30 = vector.extract_strided_slice %10 {offsets = [0, 8], sizes = [8, 8], strides = [1, 1]} : vector<8x64xf32> to vector<8x8xf32>
    %31 = vector.extract_strided_slice %10 {offsets = [0, 40], sizes = [8, 8], strides = [1, 1]} : vector<8x64xf32> to vector<8x8xf32>
    %32 = vector.extract_strided_slice %9 {offsets = [0, 8], sizes = [8, 8], strides = [1, 1]} : vector<8x32xf32> to vector<8x8xf32>
    %cst_17 = arith.constant dense<0.000000e+00> : vector<8x8xf32>
    %33 = tpu.matmul %32, %30, %cst_17 {dimension_numbers = #tpu.dot_dimension_numbers<[1], [1], [0], [0], [0, 0, 1, 0], [], []>} : vector<8x8xf32>, vector<8x8xf32>, vector<8x8xf32> -> vector<8x8xf32>
    %cst_18 = arith.constant dense<0xFF800000> : vector<8xf32>
    %34 = vector.multi_reduction <maximumf>, %33, %cst_18 [1] : vector<8x8xf32> to vector<8xf32>
    %35 = vector.shape_cast %34 : vector<8xf32> to vector<8x1xf32>
    %36 = vector.broadcast %35 : vector<8x1xf32> to vector<8x8xf32>
    %37 = arith.subf %33, %36 : vector<8x8xf32>
    %38 = math.exp %37 : vector<8x8xf32>
    %cst_19 = arith.constant dense<0.000000e+00> : vector<8xf32>
    %39 = vector.multi_reduction <add>, %38, %cst_19 [1] : vector<8x8xf32> to vector<8xf32>
    %40 = vector.shape_cast %39 : vector<8xf32> to vector<8x1xf32>
    %41 = tpu.reciprocal %40 {approx = true} : vector<8x1xf32> -> vector<8x1xf32>
    %cst_20 = arith.constant dense<0.000000e+00> : vector<8x8xf32>
    %42 = tpu.matmul %38, %31, %cst_20 {dimension_numbers = #tpu.dot_dimension_numbers<[1], [0], [0], [1], [0, 0, 1, 1], [], []>} : vector<8x8xf32>, vector<8x8xf32>, vector<8x8xf32> -> vector<8x8xf32>
    %43 = vector.broadcast %41 : vector<8x1xf32> to vector<8x8xf32>
    %44 = arith.mulf %42, %43 : vector<8x8xf32>
    %c8 = arith.constant 8 : index
    %c0_21 = arith.constant 0 : index
    %45 = vector.load %arg8[%c8, %c0_21] : memref<32x32xf32, #tpu.memory_space<vmem>>, vector<8x32xf32>
    %cst_22 = arith.constant dense<0.000000e+00> : vector<8x32xf32>
    %46 = tpu.matmul %44, %45, %cst_22 {dimension_numbers = #tpu.dot_dimension_numbers<[1], [0], [0], [1], [0, 0, 1, 1], [], []>} : vector<8x8xf32>, vector<8x32xf32>, vector<8x32xf32> -> vector<8x32xf32>
    %47 = arith.addf %29, %46 : vector<8x32xf32>
    %48 = vector.extract_strided_slice %10 {offsets = [0, 16], sizes = [8, 8], strides = [1, 1]} : vector<8x64xf32> to vector<8x8xf32>
    %49 = vector.extract_strided_slice %10 {offsets = [0, 48], sizes = [8, 8], strides = [1, 1]} : vector<8x64xf32> to vector<8x8xf32>
    %50 = vector.extract_strided_slice %9 {offsets = [0, 16], sizes = [8, 8], strides = [1, 1]} : vector<8x32xf32> to vector<8x8xf32>
    %cst_23 = arith.constant dense<0.000000e+00> : vector<8x8xf32>
    %51 = tpu.matmul %50, %48, %cst_23 {dimension_numbers = #tpu.dot_dimension_numbers<[1], [1], [0], [0], [0, 0, 1, 0], [], []>} : vector<8x8xf32>, vector<8x8xf32>, vector<8x8xf32> -> vector<8x8xf32>
    %cst_24 = arith.constant dense<0xFF800000> : vector<8xf32>
    %52 = vector.multi_reduction <maximumf>, %51, %cst_24 [1] : vector<8x8xf32> to vector<8xf32>
    %53 = vector.shape_cast %52 : vector<8xf32> to vector<8x1xf32>
    %54 = vector.broadcast %53 : vector<8x1xf32> to vector<8x8xf32>
    %55 = arith.subf %51, %54 : vector<8x8xf32>
    %56 = math.exp %55 : vector<8x8xf32>
    %cst_25 = arith.constant dense<0.000000e+00> : vector<8xf32>
    %57 = vector.multi_reduction <add>, %56, %cst_25 [1] : vector<8x8xf32> to vector<8xf32>
    %58 = vector.shape_cast %57 : vector<8xf32> to vector<8x1xf32>
    %59 = tpu.reciprocal %58 {approx = true} : vector<8x1xf32> -> vector<8x1xf32>
    %cst_26 = arith.constant dense<0.000000e+00> : vector<8x8xf32>
    %60 = tpu.matmul %56, %49, %cst_26 {dimension_numbers = #tpu.dot_dimension_numbers<[1], [0], [0], [1], [0, 0, 1, 1], [], []>} : vector<8x8xf32>, vector<8x8xf32>, vector<8x8xf32> -> vector<8x8xf32>
    %61 = vector.broadcast %59 : vector<8x1xf32> to vector<8x8xf32>
    %62 = arith.mulf %60, %61 : vector<8x8xf32>
    %c16 = arith.constant 16 : index
    %c0_27 = arith.constant 0 : index
    %63 = vector.load %arg8[%c16, %c0_27] : memref<32x32xf32, #tpu.memory_space<vmem>>, vector<8x32xf32>
    %cst_28 = arith.constant dense<0.000000e+00> : vector<8x32xf32>
    %64 = tpu.matmul %62, %63, %cst_28 {dimension_numbers = #tpu.dot_dimension_numbers<[1], [0], [0], [1], [0, 0, 1, 1], [], []>} : vector<8x8xf32>, vector<8x32xf32>, vector<8x32xf32> -> vector<8x32xf32>
    %65 = arith.addf %47, %64 : vector<8x32xf32>
    %66 = vector.extract_strided_slice %10 {offsets = [0, 24], sizes = [8, 8], strides = [1, 1]} : vector<8x64xf32> to vector<8x8xf32>
    %67 = vector.extract_strided_slice %10 {offsets = [0, 56], sizes = [8, 8], strides = [1, 1]} : vector<8x64xf32> to vector<8x8xf32>
    %68 = vector.extract_strided_slice %9 {offsets = [0, 24], sizes = [8, 8], strides = [1, 1]} : vector<8x32xf32> to vector<8x8xf32>
    %cst_29 = arith.constant dense<0.000000e+00> : vector<8x8xf32>
    %69 = tpu.matmul %68, %66, %cst_29 {dimension_numbers = #tpu.dot_dimension_numbers<[1], [1], [0], [0], [0, 0, 1, 0], [], []>} : vector<8x8xf32>, vector<8x8xf32>, vector<8x8xf32> -> vector<8x8xf32>
    %cst_30 = arith.constant dense<0xFF800000> : vector<8xf32>
    %70 = vector.multi_reduction <maximumf>, %69, %cst_30 [1] : vector<8x8xf32> to vector<8xf32>
    %71 = vector.shape_cast %70 : vector<8xf32> to vector<8x1xf32>
    %72 = vector.broadcast %71 : vector<8x1xf32> to vector<8x8xf32>
    %73 = arith.subf %69, %72 : vector<8x8xf32>
    %74 = math.exp %73 : vector<8x8xf32>
    %cst_31 = arith.constant dense<0.000000e+00> : vector<8xf32>
    %75 = vector.multi_reduction <add>, %74, %cst_31 [1] : vector<8x8xf32> to vector<8xf32>
    %76 = vector.shape_cast %75 : vector<8xf32> to vector<8x1xf32>
    %77 = tpu.reciprocal %76 {approx = true} : vector<8x1xf32> -> vector<8x1xf32>
    %cst_32 = arith.constant dense<0.000000e+00> : vector<8x8xf32>
    %78 = tpu.matmul %74, %67, %cst_32 {dimension_numbers = #tpu.dot_dimension_numbers<[1], [0], [0], [1], [0, 0, 1, 1], [], []>} : vector<8x8xf32>, vector<8x8xf32>, vector<8x8xf32> -> vector<8x8xf32>
    %79 = vector.broadcast %77 : vector<8x1xf32> to vector<8x8xf32>
    %80 = arith.mulf %78, %79 : vector<8x8xf32>
    %c24 = arith.constant 24 : index
    %c0_33 = arith.constant 0 : index
    %81 = vector.load %arg8[%c24, %c0_33] : memref<32x32xf32, #tpu.memory_space<vmem>>, vector<8x32xf32>
    %cst_34 = arith.constant dense<0.000000e+00> : vector<8x32xf32>
    %82 = tpu.matmul %80, %81, %cst_34 {dimension_numbers = #tpu.dot_dimension_numbers<[1], [0], [0], [1], [0, 0, 1, 1], [], []>} : vector<8x8xf32>, vector<8x32xf32>, vector<8x32xf32> -> vector<8x32xf32>
    %83 = arith.addf %65, %82 : vector<8x32xf32>
    %c0_35 = arith.constant 0 : index
    %c0_36 = arith.constant 0 : index
    %84 = vector.load %arg9[%c0_35, %c0_36] : memref<1x32xf32, #tpu.memory_space<vmem>>, vector<1x32xf32>
    %85 = vector.broadcast %84 : vector<1x32xf32> to vector<8x32xf32>
    %86 = arith.addf %83, %85 : vector<8x32xf32>
    %c0_37 = arith.constant 0 : index
    %c0_38 = arith.constant 0 : index
    %c0_39 = arith.constant 0 : index
    %87 = vector.load %arg10[%c0_37, %c0_38, %c0_39] : memref<1x8x32xf32, #tpu.memory_space<vmem>>, vector<1x8x32xf32>
    %88 = vector.shape_cast %87 : vector<1x8x32xf32> to vector<8x32xf32>
    %89 = vector.shape_cast %86 : vector<8x32xf32> to vector<1x8x32xf32>
    tpu.vector_store %arg10[%c0_37, %c0_38, %c0_39], %89 {strides = array<i32>} : memref<1x8x32xf32, #tpu.memory_space<vmem>>, vector<1x8x32xf32>,
    return
  }
  func.func @transform_0(%arg0: i32, %arg1: i32) -> (i32, i32, i32) {
    %c0_i32 = arith.constant 0 : i32
    %c0_i32_0 = arith.constant 0 : i32
    %c0_i32_1 = arith.constant 0 : i32
    return %arg0, %c0_i32, %c0_i32_0 : i32, i32, i32
  }
  func.func @transform_1(%arg0: i32, %arg1: i32) -> (i32, i32, i32) {
    %c0_i32 = arith.constant 0 : i32
    %c0_i32_0 = arith.constant 0 : i32
    return %arg0, %arg1, %c0_i32 : i32, i32, i32
  }
  func.func @transform_2(%arg0: i32, %arg1: i32) -> (i32, i32) {
    %c0_i32 = arith.constant 0 : i32
    %c0_i32_0 = arith.constant 0 : i32
    %c0_i32_1 = arith.constant 0 : i32
    return %c0_i32, %c0_i32_0 : i32, i32
  }
  func.func @transform_3(%arg0: i32, %arg1: i32) -> (i32, i32) {
    %c0_i32 = arith.constant 0 : i32
    %c0_i32_0 = arith.constant 0 : i32
    %c0_i32_1 = arith.constant 0 : i32
    return %c0_i32, %c0_i32_0 : i32, i32
  }
  func.func @transform_4(%arg0: i32, %arg1: i32) -> (i32, i32) {
    %c0_i32 = arith.constant 0 : i32
    %c0_i32_0 = arith.constant 0 : i32
    %c0_i32_1 = arith.constant 0 : i32
    return %c0_i32, %c0_i32_0 : i32, i32
  }
  func.func @transform_5(%arg0: i32, %arg1: i32) -> (i32, i32) {
    %c0_i32 = arith.constant 0 : i32
    %c0_i32_0 = arith.constant 0 : i32
    %c0_i32_1 = arith.constant 0 : i32
    return %c0_i32, %c0_i32_0 : i32, i32
  }
  func.func @transform_6(%arg0: i32, %arg1: i32) -> (i32, i32) {
    %c0_i32 = arith.constant 0 : i32
    %c0_i32_0 = arith.constant 0 : i32
    %c0_i32_1 = arith.constant 0 : i32
    return %c0_i32, %c0_i32_0 : i32, i32
  }
  func.func @transform_7(%arg0: i32, %arg1: i32) -> (i32, i32) {
    %c0_i32 = arith.constant 0 : i32
    %c0_i32_0 = arith.constant 0 : i32
    %c0_i32_1 = arith.constant 0 : i32
    return %c0_i32, %c0_i32_0 : i32, i32
  }
  func.func @transform_8(%arg0: i32, %arg1: i32) -> (i32, i32, i32) {
    %c0_i32 = arith.constant 0 : i32
    %c0_i32_0 = arith.constant 0 : i32
    return %arg0, %arg1, %c0_i32 : i32, i32, i32
  }
}

</mosaic_0001>

<bundles_post_ra>
// kernel: tpu_custom_call.1
= control target key start
LH: loop header
LB: loop body
LE: loop exit
PB: predicated region body
PF: predicated region fallthrough
CT: control target
= control target key end

     0   :  { %s2722_s0 = inlined_call_operand.hbm [shape: f32[2,8,32], index: 0, kind: input, shape index: {}]   ;;  %s2723_s1 = inlined_call_operand.hbm [shape: f32[2,8,32], index: 1, kind: input, shape index: {}]   ;;  %s2724_s2 = inlined_call_operand.hbm [shape: f32[32,64], index: 2, kind: input, shape index: {}]   ;;  %s2725_s3 = inlined_call_operand.vmem [shape: f32[1,64], index: 3, kind: input, shape index: {}]   ;;  %s2726_s4 = inlined_call_operand.hbm [shape: f32[32,32], index: 4, kind: input, shape index: {}]   ;;  %s2727_s5 = inlined_call_operand.vmem [shape: f32[1,32], index: 5, kind: input, shape index: {}]   ;;  %s2728_s6 = inlined_call_operand.hbm [shape: f32[32,32], index: 6, kind: input, shape index: {}]   ;;  %s2729_s7 = inlined_call_operand.vmem [shape: f32[1,32], index: 7, kind: input, shape index: {}]   ;;  %s2730_s8 = inlined_call_operand.hbm [shape: f32[2,8,32], index: 8, kind: output, shape index: {}]  }
   0x1   :  { %2738 = sst [smem:[#allocation20_spill]] %s2724_s2 }
   0x2   :  { %2739 = sst [smem:[#allocation21_spill]] %s2726_s4 }
   0x3   :  { %2740 = sst [smem:[#allocation22_spill]] %s2728_s6 }
   0x4   :  { %2741 = sst [smem:[#allocation23_spill]] %s2729_s7 }
   0x5   :  { %2742 = sst [smem:[#allocation24_spill]] %s2730_s8 }
   0x6   :  { %13 = vsyncpa [#allocation4], 0 }
   0x7   :  { %15 = vsyncpa [#allocation4 + $0x1], 0 }
   0x8   :  { %16 = vsyncpa [#allocation7], 0 }
   0x9   :  { %18 = vsyncpa [#allocation7 + $0x1], 0 }
   0xa   :  { %19 = vsyncpa [#allocation10], 0 }
   0xb   :  { %20 = vsyncpa [#allocation5], 0 }
   0xc   :  { %22 = vsyncpa [#allocation5 + $0x1], 0  ;;  %s2309_s27 = smov 0   ;;  %s2311_s28 = smov 0  }
   0xd   :  { %s2313_s29 = smov 0   ;;  %s2315_s30 = smov 0  }
   0xe   :  { %s2317_s9 = smov 0   ;;  %s2319_s10 = smov 0  }
   0xf LB: > { %2743 = sst [smem:[#allocation18_spill]] %s2224_s27  ;;  %s2340_s11 = sadd.s32 4294967295, %s2244_s10   ;;  %s2244_s10 = sphi %s2319_s10, %s28_s10   ;;  %s2240_s9 = sphi %s2317_s9, %s2773_s9   ;;  %s2236_s30 = sphi %s2315_s30, %s2772_s30   ;;  %s2232_s29 = sphi %s2313_s29, %s2771_s29   ;;  %s2228_s28 = sphi %s2311_s28, %s2770_s28   ;;  %s2224_s27 = sphi %s2309_s27, %s2769_s27  }
  0x10   : > { %s1710_s12 = sadd.s32 4294967294, %s2244_s10   ;;  %p60_p0 = scmp.ne.s32.totalorder %s2228_s28, %s2224_s27 }
  0x11   : > { %p2731_p1 = scmp.eq.s32.totalorder %s2340_s11, 0  ;;  %p246_p3 = scmp.eq.s32.totalorder %s1710_s12, 1 }
  0x12   : > { %p1711_p5 = scmp.ge.s32.totalorder %s2244_s10, 1  ;;  %p253_p7 = scmp.lt.s32.totalorder %s2244_s10, 3 }
  0x13   : > { %p2349_p4 = por %p2731_p1, %p60_p0  ;;  %p2354_p6 = por %p246_p3, %p60_p0 }
  0x14   : > { %p2359_p8 = pnand %p1711_p5, %p253_p7  ;;  %s2246_s16 = smov [#allocation8]  }
  0x15   : > { %s2744_s13 = scalar_select %p2349_p4, 1, 0 }
  0x16   : > { %s2745_s14 = scalar_select %p2354_p6, 1, 0 }
  0x17   : > { %s2747_s15 = scalar_select %p2359_p8, 1, 0 }
  0x18   : > { %2746 = sst [smem:[#allocation19_spill]] %s2745_s14  ;;  %s265_s17 = sshll.u32 %s2246_s16, 4  ;;  %s2363_s17 = int_to_ptr.vmem [resolvable:$true] %s265_s17 }
  0x19   : > { %p1898_p9 = pneg %p2359_p8  ;;  %s2247_s19 = smov [#allocation9]  }
  0x1a   : > { %s281_s20 = sshll.u32 %s2247_s19, 4  ;;  %s2248_s21 = smov [#allocation11]   ;;  %s2374_s20 = int_to_ptr.vmem [resolvable:$true] %s281_s20 }
  0x1b   : > { %p2370_p11 = pnand %p1898_p9, %p2731_p1  ;;  %s2376_s22 = sshll.u32 %s2248_s21, 4  ;;  %s298_s22 = int_to_ptr.vmem [resolvable:$true] %s2376_s22 }
  0x1c   : > { %s2749_s2 = sld [smem:[#allocation20_spill]] }
  0x1d   : > { %p2386_p13 = pneg %p2370_p11 }
  0x22   : > { %s2006_s25 = scalar_lea.hbm %s2749_s2, 512 }
  0x23   : > { %p2007_p12 = scmp.ne.s32.totalorder %s2749_s2, %s2006_s25  ;;  %p2013_p5 = scmp.lt.u32.totalorder %s2006_s25, %s2749_s2 }
  0x25   : > { %p2009_p0 = pnand %p2386_p13, %p2007_p12 }
  0x27   : > { %p2010_p3 = pneg %p2009_p0 }
  0x29   : > { %p2015_p7 = pnand %p2013_p5, %p2010_p3 }
  0x2b   : > { %2018 = shalt.err (!%p2015_p7)
}
  0x2c   : > { %s2019_s23 = scalar_lea.vmem %s2363_s17, 512  ;;  %p2027_p2 = scmp.lt.s32.totalorder %s2363_s17, %s2363_s17 }
  0x2d   : > { %p2020_p9 = scmp.ne.s32.totalorder %s2363_s17, %s2019_s23  ;;  %p2028_p6 = scmp.lt.s32.totalorder %s2019_s23, %s2019_s23 }
  0x2f   : > { %p2022_p10 = pnand %p2020_p9, %p2386_p13  ;;  %p2029_p12 = por %p2028_p6, %p2027_p2 }
  0x31   : > { %p2023_p1 = pneg %p2022_p10 }
  0x33   : > { %p2030_p0 = pnand %p2029_p12, %p2023_p1 }
  0x35   : > { %2033 = shalt.err (!%p2030_p0)
}
  0x36   : > { %s2249_s24 = smov 128   ;;  %s2250_s25 = smov 8  }
  0x37   : > { %1901 = dma.hbm_to_vmem [thread:$0]  (!%p2370_p11), %s2749_s2, 512, %s2363_s17, [#allocation7], %s2249_s24, %s2249_s24, %s2250_s25  }
  0x38   : > { %s2751_s4 = sld [smem:[#allocation21_spill]] }
  0x3e   : > { %s2034_s23 = scalar_lea.hbm %s2751_s4, 512 }
  0x3f   : > { %p2035_p1 = scmp.ne.s32.totalorder %s2751_s4, %s2034_s23  ;;  %p2041_p10 = scmp.lt.u32.totalorder %s2034_s23, %s2751_s4 }
  0x41   : > { %p2037_p2 = pnand %p2035_p1, %p2386_p13 }
  0x43   : > { %p2038_p6 = pneg %p2037_p2 }
  0x45   : > { %p2043_p3 = pnand %p2041_p10, %p2038_p6 }
  0x47   : > { %2046 = shalt.err (!%p2043_p3)
}
  0x48   : > { %s2047_s17 = scalar_lea.vmem %s2374_s20, 512  ;;  %p2055_p12 = scmp.lt.s32.totalorder %s2374_s20, %s2374_s20 }
  0x49   : > { %p2048_p5 = scmp.ne.s32.totalorder %s2374_s20, %s2047_s17  ;;  %p2056_p0 = scmp.lt.s32.totalorder %s2047_s17, %s2047_s17 }
  0x4b   : > { %p2050_p7 = pnand %p2048_p5, %p2386_p13  ;;  %p2057_p1 = por %p2056_p0, %p2055_p12 }
  0x4d   : > { %p2051_p9 = pneg %p2050_p7 }
  0x4f   : > { %p2058_p2 = pnand %p2057_p1, %p2051_p9 }
  0x51   : > { %2061 = shalt.err (!%p2058_p2)
}
  0x52   : > { %1904 = dma.hbm_to_vmem [thread:$0]  (!%p2370_p11), %s2751_s4, 512, %s2374_s20, [#allocation10], %s2249_s24, %s2249_s24, %s2250_s25  }
  0x53   : > { %s2752_s6 = sld [smem:[#allocation22_spill]] }
  0x59   : > { %s2062_s26 = scalar_lea.hbm %s2752_s6, 512 }
  0x5a   : > { %p2063_p6 = scmp.ne.s32.totalorder %s2752_s6, %s2062_s26  ;;  %p2069_p5 = scmp.lt.u32.totalorder %s2062_s26, %s2752_s6 }
  0x5c   : > { %p2065_p10 = pnand %p2063_p6, %p2386_p13 }
  0x5e   : > { %p2066_p3 = pneg %p2065_p10 }
  0x60   : > { %p2071_p7 = pnand %p2069_p5, %p2066_p3 }
  0x62   : > { %2074 = shalt.err (!%p2071_p7)
}
  0x63   : > { %s2075_s17 = scalar_lea.vmem %s298_s22, 512  ;;  %p2083_p1 = scmp.lt.s32.totalorder %s298_s22, %s298_s22 }
  0x64   : > { %p2076_p9 = scmp.ne.s32.totalorder %s298_s22, %s2075_s17  ;;  %p2084_p2 = scmp.lt.s32.totalorder %s2075_s17, %s2075_s17 }
  0x66   : > { %p2078_p12 = pnand %p2076_p9, %p2386_p13  ;;  %p2085_p4 = por %p2084_p2, %p2083_p1 }
  0x68   : > { %p2079_p0 = pneg %p2078_p12 }
  0x6a   : > { %p2086_p8 = pnand %p2085_p4, %p2079_p0 }
  0x6c   : > { %2089 = shalt.err (!%p2086_p8)
}
  0x6d   : > { %1907 = dma.hbm_to_vmem [thread:$0]  (!%p2370_p11), %s2752_s6, 512, %s298_s22, [#allocation10], %s2249_s24, %s2249_s24, %s2250_s25  }
  0x6e   : > { %s47_s16 = sadd.s32 1, %s2232_s29  ;;  %s40_s18 = sadd.s32 1, %s2240_s9 }
  0x6f   : > { %p54_p4 = scmp.ne.s32.totalorder %s2232_s29, %s2228_s28  ;;  %p42_p8 = scmp.ge.s32.totalorder %s40_s18, 2 }
  0x70   : > { %p55_p13 = scmp.eq.s32.totalorder %s2244_s10, 0  ;;  %p2753_p6 = scmp.eq.s32.totalorder %s2340_s11, 1 }
  0x71   : > { %p1922_p3 = scmp.lt.s32.totalorder %s2244_s10, 2  ;;  %s2775_s18 = smov (%p42_p8, %s40_s18), 0 }
  0x72   : > { %p2465_p10 = por %p2753_p6, %p54_p4  ;;  %p56_p5 = por %p55_p13, %p54_p4 }
  0x73   : > { %s314_s27 = sand.u32 1, %s2232_s29   ;;  %s44_s14 = ssub.s32 %s2240_s9, %s2775_s18 }
  0x74   : > { %s2754_s8 = scalar_select %p2465_p10, 1, 0 }
  0x75   : > { %p45_p11 = scmp.eq.s32.totalorder %s44_s14, 0  ;;  %s2475_s22 = sshll.u32 %s314_s27, 3 }
  0x76   : > { %s1717_s24 = sshll.u32 %s2240_s9, 7  ;;  %s318_s21 = scalar_lea.vmem [#allocation3], %s2475_s22 }
  0x77   : > { %s2479_s25 = scalar_select %p45_p11, %s2232_s29, %s47_s16  }
  0x78   : > { %s2484_s19 = scalar_lea.hbm %s2722_s0, %s1717_s24  ;;  %s325_s23 = sshll.u32 %s318_s21, 4  ;;  %s2487_s23 = int_to_ptr.vmem [resolvable:$true] %s325_s23 }
  0x79   : > { %p2491_p7 = pnand %p1922_p3, %p56_p5  ;;  %s2498_s16 = scalar_lea.hbm %s2723_s1, %s1717_s24 }
  0x7a   : > { %s332_s14 = sand.u32 1, %s2244_s10   ;;  %s315_s26 = scalar_lea.sflag [#allocation4], %s314_s27 }
  0x7b   : > { %s2090_s12 = scalar_lea.hbm %s2484_s19, 128  ;;  %p2092_p12 = pneg %p2491_p7 }
  0x7c   : > { %p2091_p9 = scmp.ne.s32.totalorder %s2484_s19, %s2090_s12  ;;  %s2095_s4 = scalar_lea.hbm %s2722_s0, 256 }
  0x7d   : > { %p2096_p2 = scmp.lt.u32.totalorder %s2484_s19, %s2722_s0  ;;  %p2097_p4 = scmp.lt.u32.totalorder %s2095_s4, %s2090_s12 }
  0x7e   : > { %p2093_p0 = pnand %p2092_p12, %p2091_p9  ;;  %p2099_p13 = scmp.lt.u32.totalorder %s2090_s12, %s2484_s19 }
  0x7f   : > { %p2098_p8 = por %p2097_p4, %p2096_p2 }
  0x80   : > { %p2094_p1 = pneg %p2093_p0 }
  0x81   : > { %p2100_p6 = por %p2099_p13, %p2098_p8 }
  0x83   : > { %p2101_p3 = pnand %p2100_p6, %p2094_p1 }
  0x85   : > { %2104 = shalt.err (!%p2101_p3)
}
  0x86   : > { %s2105_s27 = scalar_lea.vmem %s2487_s23, 128  ;;  %s2251_s2 = smov [#allocation3]  }
  0x87   : > { %p2106_p5 = scmp.ne.s32.totalorder %s2487_s23, %s2105_s27  ;;  %s2110_s24 = sshll.u32 %s2251_s2, 4  ;;  %s2111_s24 = int_to_ptr.vmem [resolvable:$false] %s2110_s24 }
  0x88   : > { %s2112_s6 = scalar_lea.vmem %s2111_s24, 256  ;;  %p2113_p0 = scmp.lt.s32.totalorder %s2487_s23, %s2111_s24 }
  0x89   : > { %p2108_p11 = pnand %p2106_p5, %p2092_p12  ;;  %p2114_p2 = scmp.lt.s32.totalorder %s2112_s6, %s2105_s27 }
  0x8b   : > { %p2109_p9 = pneg %p2108_p11  ;;  %p2115_p4 = por %p2114_p2, %p2113_p0 }
  0x8d   : > { %p2116_p8 = pnand %p2115_p4, %p2109_p9 }
  0x8f   : > { %2119 = shalt.err (!%p2116_p8)
}
  0x90   : > { %1911 = dma.hbm_to_vmem [thread:$0]  (!%p2491_p7), %s2484_s19, 128, %s2487_s23, %s315_s26  }
  0x91   : > { %s336_s4 = scalar_lea.vmem [#allocation6], %s2475_s22  ;;  %s333_s12 = scalar_lea.sflag [#allocation7], %s332_s14 }
  0x92   : > { %s344_s7 = sshll.u32 %s336_s4, 4  ;;  %s2120_s21 = scalar_lea.hbm %s2498_s16, 128  ;;  %s345_s7 = int_to_ptr.vmem [resolvable:$true] %s344_s7 }
  0x93   : > { %p2121_p1 = scmp.ne.s32.totalorder %s2498_s16, %s2120_s21  ;;  %s2125_s2 = scalar_lea.hbm %s2723_s1, 256 }
  0x94   : > { %p2126_p3 = scmp.lt.u32.totalorder %s2498_s16, %s2723_s1  ;;  %p2127_p5 = scmp.lt.u32.totalorder %s2125_s2, %s2120_s21 }
  0x95   : > { %p2123_p13 = pnand %p2121_p1, %p2092_p12  ;;  %p2129_p9 = scmp.lt.u32.totalorder %s2120_s21, %s2498_s16 }
  0x96   : > { %p2128_p11 = por %p2127_p5, %p2126_p3 }
  0x97   : > { %p2124_p6 = pneg %p2123_p13 }
  0x98   : > { %p2130_p0 = por %p2129_p9, %p2128_p11 }
  0x9a   : > { %p2131_p2 = pnand %p2130_p0, %p2124_p6 }
  0x9c   : > { %2134 = shalt.err (!%p2131_p2)
}
  0x9d   : > { %s2135_s22 = scalar_lea.vmem %s345_s7, 128  ;;  %s2252_s19 = smov [#allocation6]  }
  0x9e   : > { %p2136_p4 = scmp.ne.s32.totalorder %s345_s7, %s2135_s22  ;;  %s2140_s23 = sshll.u32 %s2252_s19, 4  ;;  %s2141_s23 = int_to_ptr.vmem [resolvable:$false] %s2140_s23 }
  0x9f   : > { %s2142_s14 = scalar_lea.vmem %s2141_s23, 256  ;;  %p2143_p13 = scmp.lt.s32.totalorder %s345_s7, %s2141_s23 }
  0xa0   : > { %p2138_p8 = pnand %p2136_p4, %p2092_p12  ;;  %p2144_p10 = scmp.lt.s32.totalorder %s2142_s14, %s2135_s22 }
  0xa2   : > { %p2139_p1 = pneg %p2138_p8  ;;  %p2145_p3 = por %p2144_p10, %p2143_p13 }
  0xa4   : > { %p2146_p5 = pnand %p2145_p3, %p2139_p1 }
  0xa6   : > { %2149 = shalt.err (!%p2146_p5)
}
  0xa7   : > { %1914 = dma.hbm_to_vmem [thread:$0]  (!%p2491_p7), %s2498_s16, 128, %s345_s7, %s333_s12  }
  0xa8   : > { %p2756_p6 = scmp.ne.s32.totalorder %s2747_s15, 0 }
  0xa9   : > { %s2551_s26 = sand.u32 (!%p2756_p6), 1, %s2228_s28   ;;  %p2757_p10 = scmp.ne.s32.totalorder (!%p2756_p6), %s2744_s13, 0 }
  0xaa   : > { %353 = sbr.rel (%p2756_p6) target bundleno = 2314 (0x90a), region = 52  ;;  %s2554_s4 = sshll.u32 (!%p2756_p6), %s2551_s26, 3 }
  0xab   : > { %s356_s21 = scalar_lea.sflag (!%p2756_p6), [#allocation4], %s2551_s26  ;;  %s359_s20 = scalar_lea.vmem (!%p2756_p6), [#allocation3], %s2554_s4 }
  0xb1   : > { %2203 = dma.done.wait (%p2757_p10), %s356_s21, 128  }
  0xb2   : > { %2205 = vsyncadd (%p2757_p10), %s356_s21, 4294967168  ;;  %s364_s15 = sand.u32 1, %s2340_s11   ;;  %s368_s16 = scalar_lea.vmem [#allocation6], %s2554_s4 }
  0xb3   : > { %s365_s17 = scalar_lea.sflag [#allocation7], %s364_s15 }
  0xb4   : > { %2207 = dma.done.wait (%p2757_p10), %s365_s17, 128  }
  0xb5   : > { %2209 = vsyncadd (%p2757_p10), %s365_s17, 4294967168  ;;  %p2758_p7 = scmp.eq.s32.totalorder %s2340_s11, 0 }
  0xb7   : > { %2211 = dma.done.wait (%p2758_p7), [#allocation7], 512   ;;  %p2759_p12 = pmov %p2758_p7 }
  0xb8   : > { %p2760_p11 = pmov %p2758_p7 }
  0xb9   : > { %2213 = vsyncadd (%p2759_p12), [#allocation7], 4294966784 }
  0xba   : > { %2215 = dma.done.wait (%p2760_p11), [#allocation10], 1024   ;;  %p2761_p9 = pmov %p2758_p7 }
  0xbb   : > { %v2253_v0 = vmov 0.0|0.0   ;;  %vm2254_vm0 = vmmov 0   ;;  %v2255_v1 = vmov 0.0   ;;  %v423_v2 = vld [vmem:[#allocation8] sm:$0xff]  ;;  %v424_v3 = vld [vmem:[#allocation8 + $0x8] sm:$0xff]  ;;  %v425_v4 = vld [vmem:[#allocation8 + $0x10] sm:$0xff] }
  0xbc   : > { %2217 = vsyncadd (%p2761_p9), [#allocation10], 4294966272  ;;  %1868 = vmatprep.subr.bf16.mxu0 %v2253_v0  ;;  %1794 = vmatprep.mubr.msk.f32.mxu0 %vm2254_vm0, %v2255_v1  ;;  %v1869_v5 = vpack.c.bf16 %v424_v3, %v423_v2  ;;  %v426_v6 = vld [vmem:[#allocation8 + $0x18] sm:$0xff]  ;;  %v511_v7 = vld [vmem:[#allocation9] sm:$0xff]  ;;  %vm434_vm1 = vcmask 261120   ;;  %vm508_vm2 = vcmask 523264  }
  0xbd   : > { %1874 = vmatprep.subr.bf16.mxu1 %v2253_v0  ;;  %1805 = vmatprep.mubr.msk.f32.mxu1 %vm2254_vm0, %v2255_v1  ;;  %v512_v8 = vld [vmem:[#allocation9 + $0x8] sm:$0xff]  ;;  %v513_v9 = vld [vmem:[#allocation9 + $0x10] sm:$0xff]  ;;  %v514_v10 = vld [vmem:[#allocation9 + $0x18] sm:$0xff]  ;;  %v1872_v11 = vpack.c.bf16 %v426_v6, %v425_v4  ;;  %vm597_vm3 = vcmask 64512   ;;  %s2256_s27 = smov 120   ;;  %s2257_s2 = smov 96  }
  0xbe   : > { %1870 = vmatpush3.bf16.msra.mxu0 %v1869_v5  ;;  %v1875_v12 = vpack.c.bf16 %v512_v8, %v511_v7  ;;  %v1878_v13 = vpack.c.bf16 %v514_v10, %v513_v9  ;;  %v422_v14 = vld [vmem:[%s359_s20] sm:$0xff]  ;;  %v510_v15 = vld [vmem:[%s368_s16] sm:$0xff]  ;;  %s2258_s24 = smov 88   ;;  %s2259_s6 = smov 112  }
  0xbf   : > { %1871 = vmatprep.subr.bf16.mxu0 %v2253_v0  ;;  %v1727_v16 = vld [vmem:[%s2725_s3] ss:$0 sm:$0xff]  ;;  %s2260_s22 = smov 104   ;;  %v761_v43 = vld [vmem:[#allocation11] sm:$0xff]  ;;  %v927_v46 = vld [vmem:[#allocation11 + $0x8] sm:$0xff]  ;;  %s2261_s19 = smov 80  }
  0xc0   : > { %1876 = vmatpush3.bf16.msra.mxu1 %v1875_v12  ;;  %v1729_v22 = vld [vmem:[%s2727_s5] ss:$0 sm:$0xff]  ;;  %s2262_s23 = smov 72   ;;  %v1239_v12 = vld [vmem:[#allocation11 + $0x10] sm:$0xff]  ;;  %s2762_s20 = sld [smem:[#allocation23_spill]] }
  0xc1   : > { %1877 = vmatprep.subr.bf16.mxu1 %v2253_v0  ;;  %s1749_s15 = sshll.u32 %s2236_s30, 7  ;;  %s417_s17 = scalar_lea.vmem [#allocation12], %s2554_s4 }
  0xc2   : > { %1873 = vmatpush3.bf16.msra.mxu0 %v1872_v11  ;;  %s1578_s16 = sshll.u32 %s417_s17, 4  ;;  %s2763_s7 = sld [smem:[#allocation24_spill]]  ;;  %s2674_s16 = int_to_ptr.vmem [resolvable:$true] %s1578_s16 }
  0xc3   : > { %1808 = vmatprep.subr.mxu0 %v2255_v1  ;;  %p2764_p2 = scmp.ne.s32.totalorder %s2754_s8, 0  ;;  %s2263_s30 = smov [#allocation12]  }
  0xc4   : > { %1879 = vmatpush3.bf16.msra.mxu1 %v1878_v13  ;;  %s2154_s4 = sshll.u32 %s2263_s30, 4  ;;  %s2155_s4 = int_to_ptr.vmem [resolvable:$false] %s2154_s4 }
  0xc5   : > { %1795 = vmatmul.mubr.msk.f32.vlgmr.msra.gmra.mrb[0].mxu0 %vm434_vm1, %v422_v14  ;;  %1813 = vmatprep.subr.mxu1 %v2255_v1  ;;  %p2157_p1 = scmp.lt.s32.totalorder %s2674_s16, %s2155_s4 }
  0xc6   : > { %1810 = vmatprep.mubr.msk.f32.mxu0 %vm2254_vm0, %v2255_v1 }
  0xc7   : > { %1806 = vmatmul.mubr.msk.f32.vlgmr.msra.gmra.mrb[0].mxu1 %vm434_vm1, %v510_v15 }
  0xc8   : > { %1815 = vmatprep.mubr.msk.f32.mxu1 %vm2254_vm0, %v2255_v1  ;;  %s2672_s12 = scalar_lea.hbm %s2763_s7, %s1749_s15 }
 0x198   : > { %v504_v17 = vpop.f32.mrb[0].mxu0 }
 0x199   : > { %v505_v18 = vadd.f32 %v1727_v16, %v504_v17  ;;  %v1796_v19 = vpop.f32.mrb[1].mxu0 }
 0x19a   : > { %v592_v20 = vpop.f32.mrb[0].mxu1 }
 0x19b   : > { %509 = vst.msk [vmem:[#allocation2] sm:$0xff] %vm508_vm2, %v505_v18  ;;  %v1807_v21 = vpop.f32.mrb[1].mxu1  ;;  %v593_v23 = vadd.f32 %v1729_v22, %v592_v20 }
 0x1a2   : > { %v2598_v24 = vld [vmem:[#allocation2] sm:$0xff] }
 0x1a3   : > { %764 = vrot.lane.b32.xlu0 %v2598_v24, %s2256_s27  ;;  %1809 = vmatpush3.xpose.msk.msra.mxu0 %vm597_vm3, %v2598_v24 }
 0x1a4   : > { %1818 = vmatprep.subr.mxu0 %v2255_v1 }
 0x1a6   : > { %1811 = vmatmul.mubr.msk.f32.vlgmr.msra.gmra.mrb[2].mxu0 %vm597_vm3, %v593_v23 }
 0x1a7   : > { %762 = vrot.lane.b32.xlu0 %v593_v23, %s2256_s27  ;;  %1820 = vmatprep.mubr.msk.f32.mxu0 %vm2254_vm0, %v2255_v1  ;;  %s1564_s27 = scalar_lea.sflag [#allocation5], %s2551_s26 }
 0x1ab   : > { %684 = vrot.lane.b32.xlu0 %v2598_v24, %s2257_s2  ;;  %s2150_s2 = scalar_lea.vmem %s2674_s16, 128 }
 0x1ac   : > { %p2151_p0 = scmp.ne.s32.totalorder %s2674_s16, %s2150_s2 }
 0x1ae   : > { %p2152_p4 = pnand %p2151_p0, %p2764_p2 }
 0x1b0   : > { %p2153_p8 = pneg %p2152_p4 }
 0x215   : > { %v765_v25 = vpop.permute.xlu0 %764 }
 0x216   : > { %1819 = vmatpush3.xpose.msk.msra.mxu0 %vm597_vm3, %v765_v25 }
 0x217   : > { %1828 = vmatprep.subr.mxu0 %v2255_v1 }
 0x219   : > { %v763_v26 = vpop.permute.xlu0 %762 }
 0x21a   : > { %1821 = vmatmul.mubr.msk.f32.vlgmr.msra.gmra.mrb[4].mxu0 %vm597_vm3, %v763_v26 }
 0x21b   : > { %1830 = vmatprep.mubr.msk.f32.mxu0 %vm2254_vm0, %v2255_v1  ;;  %1829 = vmatpush3.msra.mxu0 %v927_v46 }
 0x21c   : > { %1838 = vmatprep.subr.mxu0 %v2255_v1 }
 0x21d   : > { %v685_v27 = vpop.permute.xlu0 %684 }
 0x21e   : > { %1814 = vmatpush3.msra.mxu1 %v685_v27  ;;  %v1479_v27 = vld [vmem:[#allocation11 + $0x18] sm:$0xff] }
 0x21f   : > { %1823 = vmatprep.subr.mxu1 %v2255_v1 }
 0x279   : > { %v670_v28 = vpop.f32.mrb[2].mxu0 }
 0x27a   : > { %v1812_v29 = vpop.f32.mrb[3].mxu0  ;;  %v674_v30 = vsel %vm597_vm3, %v670_v28, -inf }
 0x27b   : > { %675 = vmax.xlane.f32.xlu1 %v674_v30 }
 0x2ed   : > { %v836_v31 = vpop.f32.mrb[4].mxu0 }
 0x2ee   : > { %v1822_v32 = vpop.f32.mrb[5].mxu0  ;;  %v840_v33 = vsel %vm597_vm3, %v836_v31, -inf }
 0x2ef   : > { %841 = vmax.xlane.f32.xlu1 %v840_v33 }
 0x300   : > { %850 = vrot.lane.b32.xlu1 %v2598_v24, %s2258_s24  ;;  %s2156_s24 = scalar_lea.vmem %s2155_s4, 256 }
 0x301   : > { %p2158_p13 = scmp.lt.s32.totalorder %s2156_s24, %s2150_s2 }
 0x303   : > { %p2159_p3 = por %p2158_p13, %p2157_p1 }
 0x304   : > { %1076 = vrot.lane.b32.xlu1 %v2598_v24, %s2259_s6 }
 0x305   : > { %p2160_p5 = pnand %p2159_p3, %p2153_p8 }
 0x308   : > { %v676_v34 = vpop.xlane.xlu1 %675  ;;  %1074 = vrot.lane.b32.xlu1 %v593_v23, %s2259_s6 }
 0x309   : > { %v677_v35 = vsub.f32 %v670_v28, %v676_v34 }
 0x30b   : > { %v678_v36 = vmul.f32 1.442695, %v677_v35 }
 0x30d   : > { %1990 = vpow2.f32 %v678_v36  ;;  %v1747_v36 = vld [vmem:[%s2762_s20] ss:$0 sm:$0xff] }
 0x317   : > { %v1991_v37 = vpop.eup %1990 }
 0x318   : > { %1816 = vmatmul.mubr.msk.f32.vlgmr.msra.gmra.mrb[2].mxu1 %vm597_vm3, %v1991_v37  ;;  %v680_v38 = vsel %vm597_vm3, %v1991_v37, 0.0 }
 0x319   : > { %1825 = vmatprep.mubr.msk.f32.mxu1 %vm2254_vm0, %v2255_v1 }
 0x32c   : > { %681 = vadd.xlane.f32.xlu1 %v680_v38 }
 0x33d   : > { %1314 = vrot.lane.b32.xlu1 %v593_v23, %s2260_s22 }
 0x37c   : > { %v842_v39 = vpop.xlane.xlu1 %841 }
 0x37d   : > { %v843_v40 = vsub.f32 %v836_v31, %v842_v39 }
 0x37f   : > { %v844_v41 = vmul.f32 1.442695, %v843_v40 }
 0x380   : > { %v851_v42 = vpop.permute.xlu1 %850 }
 0x381   : > { %1992 = vpow2.f32 %v844_v41  ;;  %1824 = vmatpush3.msra.mxu1 %v851_v42 }
 0x382   : > { %1833 = vmatprep.subr.mxu1 %v2255_v1 }
 0x384   : > { %v1077_v47 = vpop.permute.xlu1 %1076 }
 0x388   : > { %v1075_v48 = vpop.permute.xlu1 %1074 }
 0x38b   : > { %v1993_v44 = vpop.eup %1992 }
 0x38c   : > { %1826 = vmatmul.mubr.msk.f32.vlgmr.msra.gmra.mrb[4].mxu1 %vm597_vm3, %v1993_v44  ;;  %v846_v45 = vsel %vm597_vm3, %v1993_v44, 0.0 }
 0x38d   : > { %847 = vadd.xlane.f32.xlu0 %v846_v45  ;;  %1834 = vmatpush3.msra.mxu1 %v761_v43 }
 0x38e   : > { %1835 = vmatprep.mubr.msk.f32.mxu1 %vm2254_vm0, %v2255_v1  ;;  %1843 = vmatprep.subr.mxu1 %v2255_v1 }
 0x3a3   : > { %1162 = vrot.lane.b32.xlu0 %v2598_v24, %s2261_s19 }
 0x3b9   : > { %v682_v49 = vpop.xlane.xlu1 %681 }
 0x3ba   : > { %1994 = vrcp.f32 %v682_v49 }
 0x3bd   : > { %v1315_v11 = vpop.permute.xlu1 %1314 }
 0x3c4   : > { %v1995_v50 = vpop.eup %1994 }
 0x3eb   : > { %v756_v51 = vpop.f32.mrb[2].mxu1 }
 0x3ec   : > { %v760_v52 = vmul.f32 %v1995_v50, %v756_v51  ;;  %v1817_v53 = vpop.f32.mrb[3].mxu1 }
 0x3ee   : > { %1836 = vmatmul.mubr.msk.f32.vlgmr.msra.gmra.mrb[6].mxu1 %vm597_vm3, %v760_v52 }
 0x3ef   : > { %1845 = vmatprep.mubr.msk.f32.mxu1 %vm2254_vm0, %v2255_v1 }
 0x41a   : > { %v848_v54 = vpop.xlane.xlu0 %847 }
 0x41b   : > { %1996 = vrcp.f32 %v848_v54 }
 0x41e   : > { %v1163_v55 = vpop.permute.xlu0 %1162 }
 0x41f   : > { %1844 = vmatpush3.msra.mxu1 %v1163_v55 }
 0x420   : > { %1853 = vmatprep.subr.mxu1 %v2255_v1 }
 0x425   : > { %v1997_v56 = vpop.eup %1996 }
 0x45f   : > { %v922_v57 = vpop.f32.mrb[4].mxu1 }
 0x460   : > { %v926_v58 = vmul.f32 %v1997_v56, %v922_v57  ;;  %v1827_v59 = vpop.f32.mrb[5].mxu1 }
 0x462   : > { %1831 = vmatmul.mubr.msk.f32.vlgmr.msra.gmra.mrb[6].mxu0 %vm597_vm3, %v926_v58 }
 0x463   : > { %1839 = vmatpush3.xpose.msk.msra.mxu0 %vm597_vm3, %v1077_v47  ;;  %1840 = vmatprep.mubr.msk.f32.mxu0 %vm2254_vm0, %v2255_v1 }
 0x464   : > { %1848 = vmatprep.subr.mxu0 %v2255_v1 }
 0x466   : > { %1841 = vmatmul.mubr.msk.f32.vlgmr.msra.gmra.mrb[8].mxu0 %vm597_vm3, %v1075_v48 }
 0x467   : > { %1850 = vmatprep.mubr.msk.f32.mxu0 %vm2254_vm0, %v2255_v1  ;;  %1849 = vmatpush3.msra.mxu0 %v1239_v12 }
 0x468   : > { %1858 = vmatprep.subr.mxu0 %v2255_v1 }
 0x4c1   : > { %v1070_v60 = vpop.f32.mrb[6].mxu1 }
 0x4c2   : > { %v1837_v61 = vpop.f32.mrb[7].mxu1 }
 0x535   : > { %v997_v62 = vpop.f32.mrb[6].mxu0 }
 0x536   : > { %v1071_v63 = vadd.f32 %v1070_v60, %v997_v62  ;;  %v1832_v0 = vpop.f32.mrb[7].mxu0 }
 0x539   : > { %v1148_v2 = vpop.f32.mrb[8].mxu0 }
 0x53a   : > { %v1842_v3 = vpop.f32.mrb[9].mxu0  ;;  %v1152_v4 = vsel %vm597_vm3, %v1148_v2, -inf }
 0x53b   : > { %1153 = vmax.xlane.f32.xlu0 %v1152_v4 }
 0x551   : > { %1316 = vrot.lane.b32.xlu0 %v2598_v24, %s2260_s22 }
 0x5c8   : > { %v1154_v5 = vpop.xlane.xlu0 %1153 }
 0x5c9   : > { %v1155_v6 = vsub.f32 %v1148_v2, %v1154_v5 }
 0x5cb   : > { %v1156_v7 = vmul.f32 1.442695, %v1155_v6 }
 0x5cc   : > { %v1317_v9 = vpop.permute.xlu0 %1316 }
 0x5cd   : > { %1998 = vpow2.f32 %v1156_v7 }
 0x5d7   : > { %v1999_v8 = vpop.eup %1998 }
 0x5d8   : > { %1846 = vmatmul.mubr.msk.f32.vlgmr.msra.gmra.mrb[8].mxu1 %vm597_vm3, %v1999_v8  ;;  %v1158_v10 = vsel %vm597_vm3, %v1999_v8, 0.0 }
 0x5d9   : > { %1854 = vmatpush3.xpose.msk.msra.mxu1 %vm597_vm3, %v1317_v9  ;;  %1159 = vadd.xlane.f32.xlu0 %v1158_v10 }
 0x5da   : > { %1855 = vmatprep.mubr.msk.f32.mxu1 %vm2254_vm0, %v2255_v1  ;;  %1863 = vmatprep.subr.mxu1 %v2255_v1 }
 0x5dc   : > { %1856 = vmatmul.mubr.msk.f32.vlgmr.msra.gmra.mrb[10].mxu1 %vm597_vm3, %v1315_v11 }
 0x5dd   : > { %1865 = vmatprep.mubr.msk.f32.mxu1 %vm2254_vm0, %v2255_v1  ;;  %1864 = vmatpush3.msra.mxu1 %v1479_v27 }
 0x5ef   : > { %1402 = vrot.lane.b32.xlu0 %v2598_v24, %s2262_s23 }
 0x666   : > { %v1160_v13 = vpop.xlane.xlu0 %1159 }
 0x667   : > { %2000 = vrcp.f32 %v1160_v13 }
 0x66a   : > { %v1403_v18 = vpop.permute.xlu0 %1402 }
 0x671   : > { %v2001_v14 = vpop.eup %2000 }
 0x6ab   : > { %v1234_v15 = vpop.f32.mrb[8].mxu1 }
 0x6ac   : > { %v1238_v16 = vmul.f32 %v2001_v14, %v1234_v15  ;;  %v1847_v17 = vpop.f32.mrb[9].mxu1 }
 0x6ae   : > { %1851 = vmatmul.mubr.msk.f32.vlgmr.msra.gmra.mrb[10].mxu0 %vm597_vm3, %v1238_v16 }
 0x6af   : > { %1859 = vmatpush3.msra.mxu0 %v1403_v18  ;;  %v1388_v19 = vpop.f32.mrb[10].mxu1  ;;  %1860 = vmatprep.mubr.msk.f32.mxu0 %vm2254_vm0, %v2255_v1 }
 0x6b0   : > { %v1857_v20 = vpop.f32.mrb[11].mxu1  ;;  %v1392_v21 = vsel %vm597_vm3, %v1388_v19, -inf }
 0x6b1   : > { %1393 = vmax.xlane.f32.xlu1 %v1392_v21 }
 0x73e   : > { %v1394_v22 = vpop.xlane.xlu1 %1393 }
 0x73f   : > { %v1395_v23 = vsub.f32 %v1388_v19, %v1394_v22 }
 0x741   : > { %v1396_v24 = vmul.f32 1.442695, %v1395_v23 }
 0x743   : > { %2002 = vpow2.f32 %v1396_v24 }
 0x74d   : > { %v2003_v25 = vpop.eup %2002 }
 0x74e   : > { %1861 = vmatmul.mubr.msk.f32.vlgmr.msra.gmra.mrb[12].mxu0 %vm597_vm3, %v2003_v25  ;;  %v1398_v26 = vsel %vm597_vm3, %v2003_v25, 0.0 }
 0x74f   : > { %1399 = vadd.xlane.f32.xlu1 %v1398_v26 }
 0x781   : > { %v1309_v28 = vpop.f32.mrb[10].mxu0 }
 0x782   : > { %v1313_v1 = vadd.f32 %v1309_v28, %v1071_v63  ;;  %v1852_v29 = vpop.f32.mrb[11].mxu0 }
 0x7dc   : > { %v1400_v30 = vpop.xlane.xlu1 %1399 }
 0x7dd   : > { %2004 = vrcp.f32 %v1400_v30 }
 0x7e7   : > { %v2005_v31 = vpop.eup %2004 }
 0x821   : > { %v1474_v32 = vpop.f32.mrb[12].mxu0 }
 0x822   : > { %v1478_v33 = vmul.f32 %v2005_v31, %v1474_v32  ;;  %v1862_v34 = vpop.f32.mrb[13].mxu0 }
 0x824   : > { %1866 = vmatmul.mubr.msk.f32.vlgmr.msra.gmra.mrb[12].mxu1 %vm597_vm3, %v1478_v33 }
 0x8f7   : > { %v1549_v35 = vpop.f32.mrb[12].mxu1 }
 0x8f8   : > { %v1553_v37 = vadd.f32 %v1549_v35, %v1313_v1  ;;  %v1867_v38 = vpop.f32.mrb[13].mxu1 }
 0x8fa   : > { %v1561_v39 = vadd.f32 %v1747_v36, %v1553_v37 }
 0x8fc   : > { %1562 = vst.msk [vmem:[%s417_s17] sm:$0xff] %vm434_vm1, %v1561_v39 }
 0x8fd   : > { %2163 = shalt.err (!%p2160_p5)
}
 0x8fe   : > { %s2164_s26 = scalar_lea.hbm %s2672_s12, 128  ;;  %s2168_s19 = scalar_lea.hbm %s2763_s7, 256 }
 0x8ff   : > { %p2165_p6 = scmp.ne.s32.totalorder %s2672_s12, %s2164_s26  ;;  %p2169_p12 = scmp.lt.u32.totalorder %s2672_s12, %s2763_s7 }
 0x900   : > { %p2170_p11 = scmp.lt.u32.totalorder %s2168_s19, %s2164_s26  ;;  %p2172_p0 = scmp.lt.u32.totalorder %s2164_s26, %s2672_s12 }
 0x901   : > { %p2166_p10 = pnand %p2165_p6, %p2764_p2 }
 0x902   : > { %p2171_p9 = por %p2170_p11, %p2169_p12 }
 0x903   : > { %p2167_p7 = pneg %p2166_p10 }
 0x904   : > { %p2173_p4 = por %p2172_p0, %p2171_p9 }
 0x906   : > { %p2174_p8 = pnand %p2173_p4, %p2167_p7 }
 0x908   : > { %2177 = shalt.err (!%p2174_p8)
}
 0x909   : > { %1896 = dma.vmem_to_hbm [thread:$0]  (%p2764_p2), %s2674_s16, 128, %s2672_s12, %s1564_s27  }
 0x90a PF: > { %s2765_s21 = sld [smem:[#allocation18_spill]]  ;;  %s2766_s20 = sld [smem:[#allocation19_spill]] }
 0x90b   : > { %p2768_p13 = scmp.ge.s32.totalorder %s2244_s10, 2 }
 0x910   : > { %s1590_s15 = sand.u32 1, %s2765_s21   ;;  %p2767_p1 = scmp.ne.s32.totalorder %s2766_s20, 0 }
 0x911   : > { %s1591_s17 = scalar_lea.sflag [#allocation5], %s1590_s15 }
 0x912   : > { %p1916_p3 = pnand %p2768_p13, %p2767_p1 }
 0x914   : > { %2219 = dma.done.wait (!%p1916_p3), %s1591_s17, 128  }
 0x915   : > { %2221 = vsyncadd (!%p1916_p3), %s1591_s17, 4294967168  ;;  %s28_s10 = sadd.s32 1, %s2244_s10   ;;  %s2769_s27 = smov %s2228_s28 }
 0x916   : > { %p25_p5 = scmp.ge.s32.totalorder %s28_s10, 4   ;;  %s2770_s28 = smov %s2232_s29 }
 0x917   : > { %s2771_s29 = smov %s2479_s25  ;;  %s2772_s30 = smov %s2240_s9 }
 0x918   : > { %s2773_s9 = smov %s2775_s18  ;;  %27 = sbr.rel (!%p25_p5) target bundleno = 15 (0xf), region = 126 }
 0x91f   :  { %1596 = vsyncpa [#allocation4], 1 }
 0x920   :  { %1598 = vsyncpa [#allocation4 + $0x1], 1 }
 0x921   :  { %1599 = vsyncpa [#allocation7], 1 }
 0x922   :  { %1601 = vsyncpa [#allocation7 + $0x1], 1 }
 0x923   :  { %1602 = vsyncpa [#allocation10], 1 }
 0x924   :  { %1603 = vsyncpa [#allocation5], 1 }
 0x925   :  { %1605 = vsyncpa [#allocation5 + $0x1], 1 }

</bundles_post_ra>
